<compile_context>
chip_gen: v7x
topology: tpu7x:2x2x1
jax: 0.10.0
libtpu: 0.0.40
codegen_flags: <defaults>
</compile_context>

<pallas_src>
import functools

import jax
import jax.numpy as jnp
from jax.experimental import pallas as pl
from jax.experimental.pallas import tpu as pltpu


def _basic_block_kernel(x_ref, w1_ref, b1_ref, w2_ref, b2_ref, mask_ref,
                        out_ref, *, img_w, npix):
    # x_ref:    (1, C, H*W)   input batch element (residual source)
    # w1_ref:   (9, C, C)     conv1 weights, BN1 scale folded, tap-major
    # b1_ref:   (C, 1)        folded BN1 bias
    # w2_ref:   (9, C, C)     conv2 weights, BN2 scale folded
    # b2_ref:   (C, 1)        folded BN2 bias
    # mask_ref: (9, 1, H*W)   0/1 validity mask per tap (halo handling)
    # out_ref:  (1, C, H*W)
    x = x_ref[0].astype(jnp.float32)                       # (C, H*W)

    def conv3x3(v, w_ref, b_ref):
        acc = None
        t = 0
        for oy in (-1, 0, 1):
            for ox in (-1, 0, 1):
                shift = oy * img_w + ox
                if shift == 0:
                    vt = v                                  # centre tap
                else:
                    # vt[:, r] = v[:, r + shift]  (zero outside the image)
                    vt = pltpu.roll(v, (-shift) % npix, 1)
                    vt = vt * mask_ref[t]
                contrib = jax.lax.dot_general(
                    w_ref[t], vt,
                    dimension_numbers=(((1,), (0,)), ((), ())),
                    preferred_element_type=jnp.float32)     # (C, H*W)
                acc = contrib if acc is None else acc + contrib
                t += 1
        return acc + b_ref[...]

    y = jnp.maximum(conv3x3(x, w1_ref, b1_ref), 0.0)        # conv1+bn1+relu
    y = conv3x3(y, w2_ref, b2_ref) + x                      # conv2+bn2+res
    out_ref[0] = jnp.maximum(y, 0.0).astype(out_ref.dtype)  # final relu


def _fold_bn(gamma, beta, mean, var, eps=1e-5):
    scale = gamma / jnp.sqrt(var + eps)
    return scale, beta - mean * scale


def _prep_weight(w_oihw, scale):
    # PyTorch OIHW (Cout, Cin, 3, 3) -> (9, Cout, Cin), BN scale folded into
    # the output channel so the kernel epilogue is only "+ bias".
    cout, cin = w_oihw.shape[0], w_oihw.shape[1]
    w9 = jnp.transpose(w_oihw, (2, 3, 0, 1)).reshape(9, cout, cin)
    return (w9 * scale[None, :, None]).astype(jnp.float32)


def _tap_masks(h, w):
    # mask[t, 0, r] == 1 iff output pixel r = y*w + x has a valid (in-image)
    # input under tap offset t (taps enumerated oy-major, ox-minor).
    r = jnp.arange(h * w, dtype=jnp.int32)
    hh, ww = r // w, r % w
    masks = []
    for oy in (-1, 0, 1):
        for ox in (-1, 0, 1):
            valid = ((hh + oy >= 0) & (hh + oy < h) &
                     (ww + ox >= 0) & (ww + ox < w))
            masks.append(valid)
    return jnp.stack(masks).astype(jnp.float32).reshape(9, 1, h * w)


def basic_block_forward(x_nchw, params):
    """BasicBlock forward (stride=1, downsample=None). x is NCHW like PyTorch."""
    n, c, h, w = x_nchw.shape
    npix = h * w

    s1, b1 = _fold_bn(*params["bn1"])
    s2, b2 = _fold_bn(*params["bn2"])
    w1 = _prep_weight(params["w1"], s1)
    w2 = _prep_weight(params["w2"], s2)
    b1 = b1.reshape(c, 1).astype(jnp.float32)
    b2 = b2.reshape(c, 1).astype(jnp.float32)
    masks = _tap_masks(h, w)

    x2 = x_nchw.reshape(n, c, npix)          # pure metadata reshape, no copy

    kern = functools.partial(_basic_block_kernel, img_w=w, npix=npix)
    out = pl.pallas_call(
        kern,
        out_shape=jax.ShapeDtypeStruct((n, c, npix), x_nchw.dtype),
        grid=(n,),
        in_specs=[
            pl.BlockSpec((1, c, npix), lambda i: (i, 0, 0)),
            pl.BlockSpec((9, c, c), lambda i: (0, 0, 0)),
            pl.BlockSpec((c, 1), lambda i: (0, 0)),
            pl.BlockSpec((9, c, c), lambda i: (0, 0, 0)),
            pl.BlockSpec((c, 1), lambda i: (0, 0)),
            pl.BlockSpec((9, 1, npix), lambda i: (0, 0, 0)),
        ],
        out_specs=pl.BlockSpec((1, c, npix), lambda i: (i, 0, 0)),
        compiler_params=pltpu.CompilerParams(
            dimension_semantics=("parallel",)),
    )(x2, w1, b1, w2, b2, masks)
    return out.reshape(n, c, h, w)


def _reference_forward(x, params):
    """Pure-JAX reference (NCHW / OIHW) for correctness checking."""
    s1, b1 = _fold_bn(*params["bn1"])
    s2, b2 = _fold_bn(*params["bn2"])

    def conv(v, w):
        return jax.lax.conv_general_dilated(
            v, w, window_strides=(1, 1), padding="SAME",
            dimension_numbers=("NCHW", "OIHW", "NCHW"))

    def bn(v, s, b):
        return v * s[None, :, None, None] + b[None, :, None, None]

    out = jnp.maximum(bn(conv(x, params["w1"]), s1, b1), 0.0)
    out = bn(conv(out, params["w2"]), s2, b2) + x
    return jnp.maximum(out, 0.0)


if __name__ == "__main__":
    key = jax.random.PRNGKey(0)
    N, C, H, W = 2, 4, 16, 16  # inplanes == planes == 4, stride=1

    k = jax.random.split(key, 8)
    x = jax.random.normal(k[0], (N, C, H, W), jnp.float32)

    params = {
        # conv weights in PyTorch OIHW layout (Cout, Cin, 3, 3)
        "w1": 0.1 * jax.random.normal(k[1], (C, C, 3, 3), jnp.float32),
        "w2": 0.1 * jax.random.normal(k[2], (C, C, 3, 3), jnp.float32),
        # BN: (gamma, beta, running_mean, running_var)
        "bn1": (1.0 + 0.1 * jax.random.normal(k[3], (C,), jnp.float32),
                0.1 * jax.random.normal(k[4], (C,), jnp.float32),
                0.05 * jax.random.normal(k[5], (C,), jnp.float32),
                jnp.abs(1.0 + 0.1 * jax.random.normal(k[6], (C,), jnp.float32))),
        "bn2": (jnp.ones((C,), jnp.float32),
                jnp.zeros((C,), jnp.float32),
                0.05 * jax.random.normal(k[7], (C,), jnp.float32),
                jnp.ones((C,), jnp.float32)),
    }

    out = jax.block_until_ready(basic_block_forward(x, params))
    ref = jax.block_until_ready(_reference_forward(x, params))

    assert out.shape == (N, C, H, W)
    assert jnp.allclose(out, ref, atol=1e-4, rtol=1e-4), "mismatch vs reference"
    print("KERNEL_OK")
</pallas_src>

<mosaic_0001>
module attributes {stable_mosaic.version = 11 : i64} {
  func.func @_basic_block_kernel(%arg0: i32, %arg1: memref<1x4x256xf32, #tpu.memory_space<vmem>>, %arg2: memref<9x4x4xf32, #tpu.memory_space<vmem>>, %arg3: memref<4x1xf32, #tpu.memory_space<vmem>>, %arg4: memref<9x4x4xf32, #tpu.memory_space<vmem>>, %arg5: memref<4x1xf32, #tpu.memory_space<vmem>>, %arg6: memref<9x1x256xf32, #tpu.memory_space<vmem>>, %arg7: memref<1x4x256xf32, #tpu.memory_space<vmem>>) attributes {dimension_semantics = [#tpu.dimension_semantics<parallel>], iteration_bounds = array<i64: 2>, scalar_prefetch = 0 : i64, scratch_operands = 0 : i64, tpu.core_type = #tpu.core_type<tc>, window_params = [{transform_indices = @transform_0, window_bounds = array<i64: 1, 4, 256>}, {pipeline_mode = #tpu.pipeline_mode<synchronous>, transform_indices = @transform_1, window_bounds = array<i64: 9, 4, 4>}, {pipeline_mode = #tpu.pipeline_mode<synchronous>, transform_indices = @transform_2, window_bounds = array<i64: 4, 1>}, {pipeline_mode = #tpu.pipeline_mode<synchronous>, transform_indices = @transform_3, window_bounds = array<i64: 9, 4, 4>}, {pipeline_mode = #tpu.pipeline_mode<synchronous>, transform_indices = @transform_4, window_bounds = array<i64: 4, 1>}, {pipeline_mode = #tpu.pipeline_mode<synchronous>, transform_indices = @transform_5, window_bounds = array<i64: 9, 1, 256>}, {transform_indices = @transform_6, window_bounds = array<i64: 1, 4, 256>}]} {
    %c0 = arith.constant 0 : index
    %c0_0 = arith.constant 0 : index
    %c0_1 = arith.constant 0 : index
    %0 = vector.load %arg1[%c0, %c0_0, %c0_1] : memref<1x4x256xf32, #tpu.memory_space<vmem>>, vector<1x4x256xf32>
    %1 = vector.shape_cast %0 : vector<1x4x256xf32> to vector<4x256xf32>
    %c17_i32 = arith.constant 17 : i32
    %2 = tpu.dynamic_rotate %1 by %c17_i32 dim 1 : vector<4x256xf32>, i32 -> vector<4x256xf32>
    %c0_2 = arith.constant 0 : index
    %c0_3 = arith.constant 0 : index
    %c0_4 = arith.constant 0 : index
    %3 = vector.load %arg6[%c0_2, %c0_3, %c0_4] : memref<9x1x256xf32, #tpu.memory_space<vmem>>, vector<1x1x256xf32>
    %4 = vector.shape_cast %3 : vector<1x1x256xf32> to vector<1x256xf32>
    %5 = vector.broadcast %4 : vector<1x256xf32> to vector<4x256xf32>
    %6 = arith.mulf %2, %5 : vector<4x256xf32>
    %c0_5 = arith.constant 0 : index
    %c0_6 = arith.constant 0 : index
    %c0_7 = arith.constant 0 : index
    %7 = vector.load %arg2[%c0_5, %c0_6, %c0_7] : memref<9x4x4xf32, #tpu.memory_space<vmem>>, vector<1x4x4xf32>
    %8 = vector.shape_cast %7 : vector<1x4x4xf32> to vector<4x4xf32>
    %cst = arith.constant dense<0.000000e+00> : vector<4x256xf32>
    %9 = tpu.matmul %8, %6, %cst {dimension_numbers = #tpu.dot_dimension_numbers<[1], [0], [0], [1], [0, 0, 1, 1], [], []>} : vector<4x4xf32>, vector<4x256xf32>, vector<4x256xf32> -> vector<4x256xf32>
    %c16_i32 = arith.constant 16 : i32
    %10 = tpu.dynamic_rotate %1 by %c16_i32 dim 1 : vector<4x256xf32>, i32 -> vector<4x256xf32>
    %c1 = arith.constant 1 : index
    %c0_8 = arith.constant 0 : index
    %c0_9 = arith.constant 0 : index
    %11 = vector.load %arg6[%c1, %c0_8, %c0_9] : memref<9x1x256xf32, #tpu.memory_space<vmem>>, vector<1x1x256xf32>
    %12 = vector.shape_cast %11 : vector<1x1x256xf32> to vector<1x256xf32>
    %13 = vector.broadcast %12 : vector<1x256xf32> to vector<4x256xf32>
    %14 = arith.mulf %10, %13 : vector<4x256xf32>
    %c1_10 = arith.constant 1 : index
    %c0_11 = arith.constant 0 : index
    %c0_12 = arith.constant 0 : index
    %15 = vector.load %arg2[%c1_10, %c0_11, %c0_12] : memref<9x4x4xf32, #tpu.memory_space<vmem>>, vector<1x4x4xf32>
    %16 = vector.shape_cast %15 : vector<1x4x4xf32> to vector<4x4xf32>
    %cst_13 = arith.constant dense<0.000000e+00> : vector<4x256xf32>
    %17 = tpu.matmul %16, %14, %cst_13 {dimension_numbers = #tpu.dot_dimension_numbers<[1], [0], [0], [1], [0, 0, 1, 1], [], []>} : vector<4x4xf32>, vector<4x256xf32>, vector<4x256xf32> -> vector<4x256xf32>
    %18 = arith.addf %9, %17 : vector<4x256xf32>
    %c15_i32 = arith.constant 15 : i32
    %19 = tpu.dynamic_rotate %1 by %c15_i32 dim 1 : vector<4x256xf32>, i32 -> vector<4x256xf32>
    %c2 = arith.constant 2 : index
    %c0_14 = arith.constant 0 : index
    %c0_15 = arith.constant 0 : index
    %20 = vector.load %arg6[%c2, %c0_14, %c0_15] : memref<9x1x256xf32, #tpu.memory_space<vmem>>, vector<1x1x256xf32>
    %21 = vector.shape_cast %20 : vector<1x1x256xf32> to vector<1x256xf32>
    %22 = vector.broadcast %21 : vector<1x256xf32> to vector<4x256xf32>
    %23 = arith.mulf %19, %22 : vector<4x256xf32>
    %c2_16 = arith.constant 2 : index
    %c0_17 = arith.constant 0 : index
    %c0_18 = arith.constant 0 : index
    %24 = vector.load %arg2[%c2_16, %c0_17, %c0_18] : memref<9x4x4xf32, #tpu.memory_space<vmem>>, vector<1x4x4xf32>
    %25 = vector.shape_cast %24 : vector<1x4x4xf32> to vector<4x4xf32>
    %cst_19 = arith.constant dense<0.000000e+00> : vector<4x256xf32>
    %26 = tpu.matmul %25, %23, %cst_19 {dimension_numbers = #tpu.dot_dimension_numbers<[1], [0], [0], [1], [0, 0, 1, 1], [], []>} : vector<4x4xf32>, vector<4x256xf32>, vector<4x256xf32> -> vector<4x256xf32>
    %27 = arith.addf %18, %26 : vector<4x256xf32>
    %c1_i32 = arith.constant 1 : i32
    %28 = tpu.dynamic_rotate %1 by %c1_i32 dim 1 : vector<4x256xf32>, i32 -> vector<4x256xf32>
    %c3 = arith.constant 3 : index
    %c0_20 = arith.constant 0 : index
    %c0_21 = arith.constant 0 : index
    %29 = vector.load %arg6[%c3, %c0_20, %c0_21] : memref<9x1x256xf32, #tpu.memory_space<vmem>>, vector<1x1x256xf32>
    %30 = vector.shape_cast %29 : vector<1x1x256xf32> to vector<1x256xf32>
    %31 = vector.broadcast %30 : vector<1x256xf32> to vector<4x256xf32>
    %32 = arith.mulf %28, %31 : vector<4x256xf32>
    %c3_22 = arith.constant 3 : index
    %c0_23 = arith.constant 0 : index
    %c0_24 = arith.constant 0 : index
    %33 = vector.load %arg2[%c3_22, %c0_23, %c0_24] : memref<9x4x4xf32, #tpu.memory_space<vmem>>, vector<1x4x4xf32>
    %34 = vector.shape_cast %33 : vector<1x4x4xf32> to vector<4x4xf32>
    %cst_25 = arith.constant dense<0.000000e+00> : vector<4x256xf32>
    %35 = tpu.matmul %34, %32, %cst_25 {dimension_numbers = #tpu.dot_dimension_numbers<[1], [0], [0], [1], [0, 0, 1, 1], [], []>} : vector<4x4xf32>, vector<4x256xf32>, vector<4x256xf32> -> vector<4x256xf32>
    %36 = arith.addf %27, %35 : vector<4x256xf32>
    %c4 = arith.constant 4 : index
    %c0_26 = arith.constant 0 : index
    %c0_27 = arith.constant 0 : index
    %37 = vector.load %arg2[%c4, %c0_26, %c0_27] : memref<9x4x4xf32, #tpu.memory_space<vmem>>, vector<1x4x4xf32>
    %38 = vector.shape_cast %37 : vector<1x4x4xf32> to vector<4x4xf32>
    %cst_28 = arith.constant dense<0.000000e+00> : vector<4x256xf32>
    %39 = tpu.matmul %38, %1, %cst_28 {dimension_numbers = #tpu.dot_dimension_numbers<[1], [0], [0], [1], [0, 0, 1, 1], [], []>} : vector<4x4xf32>, vector<4x256xf32>, vector<4x256xf32> -> vector<4x256xf32>
    %40 = arith.addf %36, %39 : vector<4x256xf32>
    %c255_i32 = arith.constant 255 : i32
    %41 = tpu.dynamic_rotate %1 by %c255_i32 dim 1 : vector<4x256xf32>, i32 -> vector<4x256xf32>
    %c5 = arith.constant 5 : index
    %c0_29 = arith.constant 0 : index
    %c0_30 = arith.constant 0 : index
    %42 = vector.load %arg6[%c5, %c0_29, %c0_30] : memref<9x1x256xf32, #tpu.memory_space<vmem>>, vector<1x1x256xf32>
    %43 = vector.shape_cast %42 : vector<1x1x256xf32> to vector<1x256xf32>
    %44 = vector.broadcast %43 : vector<1x256xf32> to vector<4x256xf32>
    %45 = arith.mulf %41, %44 : vector<4x256xf32>
    %c5_31 = arith.constant 5 : index
    %c0_32 = arith.constant 0 : index
    %c0_33 = arith.constant 0 : index
    %46 = vector.load %arg2[%c5_31, %c0_32, %c0_33] : memref<9x4x4xf32, #tpu.memory_space<vmem>>, vector<1x4x4xf32>
    %47 = vector.shape_cast %46 : vector<1x4x4xf32> to vector<4x4xf32>
    %cst_34 = arith.constant dense<0.000000e+00> : vector<4x256xf32>
    %48 = tpu.matmul %47, %45, %cst_34 {dimension_numbers = #tpu.dot_dimension_numbers<[1], [0], [0], [1], [0, 0, 1, 1], [], []>} : vector<4x4xf32>, vector<4x256xf32>, vector<4x256xf32> -> vector<4x256xf32>
    %49 = arith.addf %40, %48 : vector<4x256xf32>
    %c241_i32 = arith.constant 241 : i32
    %50 = tpu.dynamic_rotate %1 by %c241_i32 dim 1 : vector<4x256xf32>, i32 -> vector<4x256xf32>
    %c6 = arith.constant 6 : index
    %c0_35 = arith.constant 0 : index
    %c0_36 = arith.constant 0 : index
    %51 = vector.load %arg6[%c6, %c0_35, %c0_36] : memref<9x1x256xf32, #tpu.memory_space<vmem>>, vector<1x1x256xf32>
    %52 = vector.shape_cast %51 : vector<1x1x256xf32> to vector<1x256xf32>
    %53 = vector.broadcast %52 : vector<1x256xf32> to vector<4x256xf32>
    %54 = arith.mulf %50, %53 : vector<4x256xf32>
    %c6_37 = arith.constant 6 : index
    %c0_38 = arith.constant 0 : index
    %c0_39 = arith.constant 0 : index
    %55 = vector.load %arg2[%c6_37, %c0_38, %c0_39] : memref<9x4x4xf32, #tpu.memory_space<vmem>>, vector<1x4x4xf32>
    %56 = vector.shape_cast %55 : vector<1x4x4xf32> to vector<4x4xf32>
    %cst_40 = arith.constant dense<0.000000e+00> : vector<4x256xf32>
    %57 = tpu.matmul %56, %54, %cst_40 {dimension_numbers = #tpu.dot_dimension_numbers<[1], [0], [0], [1], [0, 0, 1, 1], [], []>} : vector<4x4xf32>, vector<4x256xf32>, vector<4x256xf32> -> vector<4x256xf32>
    %58 = arith.addf %49, %57 : vector<4x256xf32>
    %c240_i32 = arith.constant 240 : i32
    %59 = tpu.dynamic_rotate %1 by %c240_i32 dim 1 : vector<4x256xf32>, i32 -> vector<4x256xf32>
    %c7 = arith.constant 7 : index
    %c0_41 = arith.constant 0 : index
    %c0_42 = arith.constant 0 : index
    %60 = vector.load %arg6[%c7, %c0_41, %c0_42] : memref<9x1x256xf32, #tpu.memory_space<vmem>>, vector<1x1x256xf32>
    %61 = vector.shape_cast %60 : vector<1x1x256xf32> to vector<1x256xf32>
    %62 = vector.broadcast %61 : vector<1x256xf32> to vector<4x256xf32>
    %63 = arith.mulf %59, %62 : vector<4x256xf32>
    %c7_43 = arith.constant 7 : index
    %c0_44 = arith.constant 0 : index
    %c0_45 = arith.constant 0 : index
    %64 = vector.load %arg2[%c7_43, %c0_44, %c0_45] : memref<9x4x4xf32, #tpu.memory_space<vmem>>, vector<1x4x4xf32>
    %65 = vector.shape_cast %64 : vector<1x4x4xf32> to vector<4x4xf32>
    %cst_46 = arith.constant dense<0.000000e+00> : vector<4x256xf32>
    %66 = tpu.matmul %65, %63, %cst_46 {dimension_numbers = #tpu.dot_dimension_numbers<[1], [0], [0], [1], [0, 0, 1, 1], [], []>} : vector<4x4xf32>, vector<4x256xf32>, vector<4x256xf32> -> vector<4x256xf32>
    %67 = arith.addf %58, %66 : vector<4x256xf32>
    %c239_i32 = arith.constant 239 : i32
    %68 = tpu.dynamic_rotate %1 by %c239_i32 dim 1 : vector<4x256xf32>, i32 -> vector<4x256xf32>
    %c8 = arith.constant 8 : index
    %c0_47 = arith.constant 0 : index
    %c0_48 = arith.constant 0 : index
    %69 = vector.load %arg6[%c8, %c0_47, %c0_48] : memref<9x1x256xf32, #tpu.memory_space<vmem>>, vector<1x1x256xf32>
    %70 = vector.shape_cast %69 : vector<1x1x256xf32> to vector<1x256xf32>
    %71 = vector.broadcast %70 : vector<1x256xf32> to vector<4x256xf32>
    %72 = arith.mulf %68, %71 : vector<4x256xf32>
    %c8_49 = arith.constant 8 : index
    %c0_50 = arith.constant 0 : index
    %c0_51 = arith.constant 0 : index
    %73 = vector.load %arg2[%c8_49, %c0_50, %c0_51] : memref<9x4x4xf32, #tpu.memory_space<vmem>>, vector<1x4x4xf32>
    %74 = vector.shape_cast %73 : vector<1x4x4xf32> to vector<4x4xf32>
    %cst_52 = arith.constant dense<0.000000e+00> : vector<4x256xf32>
    %75 = tpu.matmul %74, %72, %cst_52 {dimension_numbers = #tpu.dot_dimension_numbers<[1], [0], [0], [1], [0, 0, 1, 1], [], []>} : vector<4x4xf32>, vector<4x256xf32>, vector<4x256xf32> -> vector<4x256xf32>
    %76 = arith.addf %67, %75 : vector<4x256xf32>
    %c0_53 = arith.constant 0 : index
    %c0_54 = arith.constant 0 : index
    %77 = vector.load %arg3[%c0_53, %c0_54] : memref<4x1xf32, #tpu.memory_space<vmem>>, vector<4x1xf32>
    %78 = vector.broadcast %77 : vector<4x1xf32> to vector<4x256xf32>
    %79 = arith.addf %76, %78 : vector<4x256xf32>
    %cst_55 = arith.constant 0.000000e+00 : f32
    %80 = vector.broadcast %cst_55 : f32 to vector<4x256xf32>
    %81 = arith.maximumf %79, %80 : vector<4x256xf32>
    %c17_i32_56 = arith.constant 17 : i32
    %82 = tpu.dynamic_rotate %81 by %c17_i32_56 dim 1 : vector<4x256xf32>, i32 -> vector<4x256xf32>
    %c0_57 = arith.constant 0 : index
    %c0_58 = arith.constant 0 : index
    %c0_59 = arith.constant 0 : index
    %83 = vector.load %arg6[%c0_57, %c0_58, %c0_59] : memref<9x1x256xf32, #tpu.memory_space<vmem>>, vector<1x1x256xf32>
    %84 = vector.shape_cast %83 : vector<1x1x256xf32> to vector<1x256xf32>
    %85 = vector.broadcast %84 : vector<1x256xf32> to vector<4x256xf32>
    %86 = arith.mulf %82, %85 : vector<4x256xf32>
    %c0_60 = arith.constant 0 : index
    %c0_61 = arith.constant 0 : index
    %c0_62 = arith.constant 0 : index
    %87 = vector.load %arg4[%c0_60, %c0_61, %c0_62] : memref<9x4x4xf32, #tpu.memory_space<vmem>>, vector<1x4x4xf32>
    %88 = vector.shape_cast %87 : vector<1x4x4xf32> to vector<4x4xf32>
    %cst_63 = arith.constant dense<0.000000e+00> : vector<4x256xf32>
    %89 = tpu.matmul %88, %86, %cst_63 {dimension_numbers = #tpu.dot_dimension_numbers<[1], [0], [0], [1], [0, 0, 1, 1], [], []>} : vector<4x4xf32>, vector<4x256xf32>, vector<4x256xf32> -> vector<4x256xf32>
    %c16_i32_64 = arith.constant 16 : i32
    %90 = tpu.dynamic_rotate %81 by %c16_i32_64 dim 1 : vector<4x256xf32>, i32 -> vector<4x256xf32>
    %c1_65 = arith.constant 1 : index
    %c0_66 = arith.constant 0 : index
    %c0_67 = arith.constant 0 : index
    %91 = vector.load %arg6[%c1_65, %c0_66, %c0_67] : memref<9x1x256xf32, #tpu.memory_space<vmem>>, vector<1x1x256xf32>
    %92 = vector.shape_cast %91 : vector<1x1x256xf32> to vector<1x256xf32>
    %93 = vector.broadcast %92 : vector<1x256xf32> to vector<4x256xf32>
    %94 = arith.mulf %90, %93 : vector<4x256xf32>
    %c1_68 = arith.constant 1 : index
    %c0_69 = arith.constant 0 : index
    %c0_70 = arith.constant 0 : index
    %95 = vector.load %arg4[%c1_68, %c0_69, %c0_70] : memref<9x4x4xf32, #tpu.memory_space<vmem>>, vector<1x4x4xf32>
    %96 = vector.shape_cast %95 : vector<1x4x4xf32> to vector<4x4xf32>
    %cst_71 = arith.constant dense<0.000000e+00> : vector<4x256xf32>
    %97 = tpu.matmul %96, %94, %cst_71 {dimension_numbers = #tpu.dot_dimension_numbers<[1], [0], [0], [1], [0, 0, 1, 1], [], []>} : vector<4x4xf32>, vector<4x256xf32>, vector<4x256xf32> -> vector<4x256xf32>
    %98 = arith.addf %89, %97 : vector<4x256xf32>
    %c15_i32_72 = arith.constant 15 : i32
    %99 = tpu.dynamic_rotate %81 by %c15_i32_72 dim 1 : vector<4x256xf32>, i32 -> vector<4x256xf32>
    %c2_73 = arith.constant 2 : index
    %c0_74 = arith.constant 0 : index
    %c0_75 = arith.constant 0 : index
    %100 = vector.load %arg6[%c2_73, %c0_74, %c0_75] : memref<9x1x256xf32, #tpu.memory_space<vmem>>, vector<1x1x256xf32>
    %101 = vector.shape_cast %100 : vector<1x1x256xf32> to vector<1x256xf32>
    %102 = vector.broadcast %101 : vector<1x256xf32> to vector<4x256xf32>
    %103 = arith.mulf %99, %102 : vector<4x256xf32>
    %c2_76 = arith.constant 2 : index
    %c0_77 = arith.constant 0 : index
    %c0_78 = arith.constant 0 : index
    %104 = vector.load %arg4[%c2_76, %c0_77, %c0_78] : memref<9x4x4xf32, #tpu.memory_space<vmem>>, vector<1x4x4xf32>
    %105 = vector.shape_cast %104 : vector<1x4x4xf32> to vector<4x4xf32>
    %cst_79 = arith.constant dense<0.000000e+00> : vector<4x256xf32>
    %106 = tpu.matmul %105, %103, %cst_79 {dimension_numbers = #tpu.dot_dimension_numbers<[1], [0], [0], [1], [0, 0, 1, 1], [], []>} : vector<4x4xf32>, vector<4x256xf32>, vector<4x256xf32> -> vector<4x256xf32>
    %107 = arith.addf %98, %106 : vector<4x256xf32>
    %c1_i32_80 = arith.constant 1 : i32
    %108 = tpu.dynamic_rotate %81 by %c1_i32_80 dim 1 : vector<4x256xf32>, i32 -> vector<4x256xf32>
    %c3_81 = arith.constant 3 : index
    %c0_82 = arith.constant 0 : index
    %c0_83 = arith.constant 0 : index
    %109 = vector.load %arg6[%c3_81, %c0_82, %c0_83] : memref<9x1x256xf32, #tpu.memory_space<vmem>>, vector<1x1x256xf32>
    %110 = vector.shape_cast %109 : vector<1x1x256xf32> to vector<1x256xf32>
    %111 = vector.broadcast %110 : vector<1x256xf32> to vector<4x256xf32>
    %112 = arith.mulf %108, %111 : vector<4x256xf32>
    %c3_84 = arith.constant 3 : index
    %c0_85 = arith.constant 0 : index
    %c0_86 = arith.constant 0 : index
    %113 = vector.load %arg4[%c3_84, %c0_85, %c0_86] : memref<9x4x4xf32, #tpu.memory_space<vmem>>, vector<1x4x4xf32>
    %114 = vector.shape_cast %113 : vector<1x4x4xf32> to vector<4x4xf32>
    %cst_87 = arith.constant dense<0.000000e+00> : vector<4x256xf32>
    %115 = tpu.matmul %114, %112, %cst_87 {dimension_numbers = #tpu.dot_dimension_numbers<[1], [0], [0], [1], [0, 0, 1, 1], [], []>} : vector<4x4xf32>, vector<4x256xf32>, vector<4x256xf32> -> vector<4x256xf32>
    %116 = arith.addf %107, %115 : vector<4x256xf32>
    %c4_88 = arith.constant 4 : index
    %c0_89 = arith.constant 0 : index
    %c0_90 = arith.constant 0 : index
    %117 = vector.load %arg4[%c4_88, %c0_89, %c0_90] : memref<9x4x4xf32, #tpu.memory_space<vmem>>, vector<1x4x4xf32>
    %118 = vector.shape_cast %117 : vector<1x4x4xf32> to vector<4x4xf32>
    %cst_91 = arith.constant dense<0.000000e+00> : vector<4x256xf32>
    %119 = tpu.matmul %118, %81, %cst_91 {dimension_numbers = #tpu.dot_dimension_numbers<[1], [0], [0], [1], [0, 0, 1, 1], [], []>} : vector<4x4xf32>, vector<4x256xf32>, vector<4x256xf32> -> vector<4x256xf32>
    %120 = arith.addf %116, %119 : vector<4x256xf32>
    %c255_i32_92 = arith.constant 255 : i32
    %121 = tpu.dynamic_rotate %81 by %c255_i32_92 dim 1 : vector<4x256xf32>, i32 -> vector<4x256xf32>
    %c5_93 = arith.constant 5 : index
    %c0_94 = arith.constant 0 : index
    %c0_95 = arith.constant 0 : index
    %122 = vector.load %arg6[%c5_93, %c0_94, %c0_95] : memref<9x1x256xf32, #tpu.memory_space<vmem>>, vector<1x1x256xf32>
    %123 = vector.shape_cast %122 : vector<1x1x256xf32> to vector<1x256xf32>
    %124 = vector.broadcast %123 : vector<1x256xf32> to vector<4x256xf32>
    %125 = arith.mulf %121, %124 : vector<4x256xf32>
    %c5_96 = arith.constant 5 : index
    %c0_97 = arith.constant 0 : index
    %c0_98 = arith.constant 0 : index
    %126 = vector.load %arg4[%c5_96, %c0_97, %c0_98] : memref<9x4x4xf32, #tpu.memory_space<vmem>>, vector<1x4x4xf32>
    %127 = vector.shape_cast %126 : vector<1x4x4xf32> to vector<4x4xf32>
    %cst_99 = arith.constant dense<0.000000e+00> : vector<4x256xf32>
    %128 = tpu.matmul %127, %125, %cst_99 {dimension_numbers = #tpu.dot_dimension_numbers<[1], [0], [0], [1], [0, 0, 1, 1], [], []>} : vector<4x4xf32>, vector<4x256xf32>, vector<4x256xf32> -> vector<4x256xf32>
    %129 = arith.addf %120, %128 : vector<4x256xf32>
    %c241_i32_100 = arith.constant 241 : i32
    %130 = tpu.dynamic_rotate %81 by %c241_i32_100 dim 1 : vector<4x256xf32>, i32 -> vector<4x256xf32>
    %c6_101 = arith.constant 6 : index
    %c0_102 = arith.constant 0 : index
    %c0_103 = arith.constant 0 : index
    %131 = vector.load %arg6[%c6_101, %c0_102, %c0_103] : memref<9x1x256xf32, #tpu.memory_space<vmem>>, vector<1x1x256xf32>
    %132 = vector.shape_cast %131 : vector<1x1x256xf32> to vector<1x256xf32>
    %133 = vector.broadcast %132 : vector<1x256xf32> to vector<4x256xf32>
    %134 = arith.mulf %130, %133 : vector<4x256xf32>
    %c6_104 = arith.constant 6 : index
    %c0_105 = arith.constant 0 : index
    %c0_106 = arith.constant 0 : index
    %135 = vector.load %arg4[%c6_104, %c0_105, %c0_106] : memref<9x4x4xf32, #tpu.memory_space<vmem>>, vector<1x4x4xf32>
    %136 = vector.shape_cast %135 : vector<1x4x4xf32> to vector<4x4xf32>
    %cst_107 = arith.constant dense<0.000000e+00> : vector<4x256xf32>
    %137 = tpu.matmul %136, %134, %cst_107 {dimension_numbers = #tpu.dot_dimension_numbers<[1], [0], [0], [1], [0, 0, 1, 1], [], []>} : vector<4x4xf32>, vector<4x256xf32>, vector<4x256xf32> -> vector<4x256xf32>
    %138 = arith.addf %129, %137 : vector<4x256xf32>
    %c240_i32_108 = arith.constant 240 : i32
    %139 = tpu.dynamic_rotate %81 by %c240_i32_108 dim 1 : vector<4x256xf32>, i32 -> vector<4x256xf32>
    %c7_109 = arith.constant 7 : index
    %c0_110 = arith.constant 0 : index
    %c0_111 = arith.constant 0 : index
    %140 = vector.load %arg6[%c7_109, %c0_110, %c0_111] : memref<9x1x256xf32, #tpu.memory_space<vmem>>, vector<1x1x256xf32>
    %141 = vector.shape_cast %140 : vector<1x1x256xf32> to vector<1x256xf32>
    %142 = vector.broadcast %141 : vector<1x256xf32> to vector<4x256xf32>
    %143 = arith.mulf %139, %142 : vector<4x256xf32>
    %c7_112 = arith.constant 7 : index
    %c0_113 = arith.constant 0 : index
    %c0_114 = arith.constant 0 : index
    %144 = vector.load %arg4[%c7_112, %c0_113, %c0_114] : memref<9x4x4xf32, #tpu.memory_space<vmem>>, vector<1x4x4xf32>
    %145 = vector.shape_cast %144 : vector<1x4x4xf32> to vector<4x4xf32>
    %cst_115 = arith.constant dense<0.000000e+00> : vector<4x256xf32>
    %146 = tpu.matmul %145, %143, %cst_115 {dimension_numbers = #tpu.dot_dimension_numbers<[1], [0], [0], [1], [0, 0, 1, 1], [], []>} : vector<4x4xf32>, vector<4x256xf32>, vector<4x256xf32> -> vector<4x256xf32>
    %147 = arith.addf %138, %146 : vector<4x256xf32>
    %c239_i32_116 = arith.constant 239 : i32
    %148 = tpu.dynamic_rotate %81 by %c239_i32_116 dim 1 : vector<4x256xf32>, i32 -> vector<4x256xf32>
    %c8_117 = arith.constant 8 : index
    %c0_118 = arith.constant 0 : index
    %c0_119 = arith.constant 0 : index
    %149 = vector.load %arg6[%c8_117, %c0_118, %c0_119] : memref<9x1x256xf32, #tpu.memory_space<vmem>>, vector<1x1x256xf32>
    %150 = vector.shape_cast %149 : vector<1x1x256xf32> to vector<1x256xf32>
    %151 = vector.broadcast %150 : vector<1x256xf32> to vector<4x256xf32>
    %152 = arith.mulf %148, %151 : vector<4x256xf32>
    %c8_120 = arith.constant 8 : index
    %c0_121 = arith.constant 0 : index
    %c0_122 = arith.constant 0 : index
    %153 = vector.load %arg4[%c8_120, %c0_121, %c0_122] : memref<9x4x4xf32, #tpu.memory_space<vmem>>, vector<1x4x4xf32>
    %154 = vector.shape_cast %153 : vector<1x4x4xf32> to vector<4x4xf32>
    %cst_123 = arith.constant dense<0.000000e+00> : vector<4x256xf32>
    %155 = tpu.matmul %154, %152, %cst_123 {dimension_numbers = #tpu.dot_dimension_numbers<[1], [0], [0], [1], [0, 0, 1, 1], [], []>} : vector<4x4xf32>, vector<4x256xf32>, vector<4x256xf32> -> vector<4x256xf32>
    %156 = arith.addf %147, %155 : vector<4x256xf32>
    %c0_124 = arith.constant 0 : index
    %c0_125 = arith.constant 0 : index
    %157 = vector.load %arg5[%c0_124, %c0_125] : memref<4x1xf32, #tpu.memory_space<vmem>>, vector<4x1xf32>
    %158 = vector.broadcast %157 : vector<4x1xf32> to vector<4x256xf32>
    %159 = arith.addf %156, %158 : vector<4x256xf32>
    %160 = arith.addf %159, %1 : vector<4x256xf32>
    %cst_126 = arith.constant 0.000000e+00 : f32
    %161 = vector.broadcast %cst_126 : f32 to vector<4x256xf32>
    %162 = arith.maximumf %160, %161 : vector<4x256xf32>
    %c0_127 = arith.constant 0 : index
    %c0_128 = arith.constant 0 : index
    %c0_129 = arith.constant 0 : index
    %163 = vector.load %arg7[%c0_127, %c0_128, %c0_129] : memref<1x4x256xf32, #tpu.memory_space<vmem>>, vector<1x4x256xf32>
    %164 = vector.shape_cast %163 : vector<1x4x256xf32> to vector<4x256xf32>
    %165 = vector.shape_cast %162 : vector<4x256xf32> to vector<1x4x256xf32>
    tpu.vector_store %arg7[%c0_127, %c0_128, %c0_129], %165 {strides = array<i32>} : memref<1x4x256xf32, #tpu.memory_space<vmem>>, vector<1x4x256xf32>,
    return
  }
  func.func @transform_0(%arg0: i32) -> (i32, i32, i32) {
    %c0_i32 = arith.constant 0 : i32
    %c0_i32_0 = arith.constant 0 : i32
    %c0_i32_1 = arith.constant 0 : i32
    return %arg0, %c0_i32, %c0_i32_0 : i32, i32, i32
  }
  func.func @transform_1(%arg0: i32) -> (i32, i32, i32) {
    %c0_i32 = arith.constant 0 : i32
    %c0_i32_0 = arith.constant 0 : i32
    %c0_i32_1 = arith.constant 0 : i32
    %c0_i32_2 = arith.constant 0 : i32
    return %c0_i32, %c0_i32_0, %c0_i32_1 : i32, i32, i32
  }
  func.func @transform_2(%arg0: i32) -> (i32, i32) {
    %c0_i32 = arith.constant 0 : i32
    %c0_i32_0 = arith.constant 0 : i32
    %c0_i32_1 = arith.constant 0 : i32
    return %c0_i32, %c0_i32_0 : i32, i32
  }
  func.func @transform_3(%arg0: i32) -> (i32, i32, i32) {
    %c0_i32 = arith.constant 0 : i32
    %c0_i32_0 = arith.constant 0 : i32
    %c0_i32_1 = arith.constant 0 : i32
    %c0_i32_2 = arith.constant 0 : i32
    return %c0_i32, %c0_i32_0, %c0_i32_1 : i32, i32, i32
  }
  func.func @transform_4(%arg0: i32) -> (i32, i32) {
    %c0_i32 = arith.constant 0 : i32
    %c0_i32_0 = arith.constant 0 : i32
    %c0_i32_1 = arith.constant 0 : i32
    return %c0_i32, %c0_i32_0 : i32, i32
  }
  func.func @transform_5(%arg0: i32) -> (i32, i32, i32) {
    %c0_i32 = arith.constant 0 : i32
    %c0_i32_0 = arith.constant 0 : i32
    %c0_i32_1 = arith.constant 0 : i32
    %c0_i32_2 = arith.constant 0 : i32
    return %c0_i32, %c0_i32_0, %c0_i32_1 : i32, i32, i32
  }
  func.func @transform_6(%arg0: i32) -> (i32, i32, i32) {
    %c0_i32 = arith.constant 0 : i32
    %c0_i32_0 = arith.constant 0 : i32
    %c0_i32_1 = arith.constant 0 : i32
    return %arg0, %c0_i32, %c0_i32_0 : i32, i32, i32
  }
}

</mosaic_0001>

<bundles_post_ra>
// kernel: tpu_custom_call.1
= control target key start
LH: loop header
LB: loop body
LE: loop exit
PB: predicated region body
PF: predicated region fallthrough
CT: control target
= control target key end

     0   :  { %11 = vsyncpa [#allocation3], 0  ;;  %s2865_s0 = inlined_call_operand.vmem [shape: f32[2,4,256], index: 0, kind: input, shape index: {}]   ;;  %s2866_s1 = inlined_call_operand.vmem [shape: f32[9,4,4], index: 1, kind: input, shape index: {}]   ;;  %s2867_s2 = inlined_call_operand.vmem [shape: f32[4,1], index: 2, kind: input, shape index: {}]   ;;  %s2868_s3 = inlined_call_operand.vmem [shape: f32[9,4,4], index: 3, kind: input, shape index: {}]   ;;  %s2869_s4 = inlined_call_operand.vmem [shape: f32[4,1], index: 4, kind: input, shape index: {}]   ;;  %s2870_s5 = inlined_call_operand.vmem [shape: f32[9,1,256], index: 5, kind: input, shape index: {}]   ;;  %s2871_s6 = inlined_call_operand.hbm [shape: f32[2,4,256], index: 6, kind: output, shape index: {}]  }
   0x1   :  { %13 = vsyncpa [#allocation3 + $0x1], 0  ;;  %s2382_s21 = smov 0   ;;  %s2384_s22 = smov 0  }
   0x2   :  { %s2386_s23 = smov 0   ;;  %s2388_s24 = smov 0  }
   0x3 LB: > { %s2403_s25 = sadd.s32 4294967295, %s2334_s24   ;;  %s2098_s26 = sadd.s32 4294967294, %s2334_s24   ;;  %s2334_s24 = sphi %s2388_s24, %s2877_s24   ;;  %s2330_s23 = sphi %s2386_s23, %s2876_s23   ;;  %s2326_s22 = sphi %s2384_s22, %s2875_s22   ;;  %s2322_s21 = sphi %s2382_s21, %s2874_s21  }
   0x4   : > { %s2407_s27 = sadd.s32 1, %s2334_s24   ;;  %s157_s28 = sadd.s32 1, %s2330_s23 }
   0x5   : > { %s154_s29 = ssub.s32 %s2334_s24, %s2407_s27  ;;  %p167_p0 = scmp.ne.s32.totalorder %s2330_s23, %s2326_s22 }
   0x6   : > { %p155_p1 = scmp.eq.s32.totalorder %s154_s29, 0  ;;  %p168_p2 = scmp.eq.s32.totalorder %s2403_s25, 1 }
   0x7   : > { %p173_p3 = scmp.ne.s32.totalorder %s2326_s22, %s2322_s21  ;;  %p174_p4 = scmp.eq.s32.totalorder %s2098_s26, 1 }
   0x8   : > { %s2418_s30 = scalar_select %p155_p1, %s2330_s23, %s157_s28  }
   0x9   : > { %p2420_p5 = por %p168_p2, %p167_p0  ;;  %p2424_p6 = por %p174_p4, %p173_p3 }
   0xa   : > { %p2101_p7 = scmp.ge.s32.totalorder %s2334_s24, 1  ;;  %p215_p8 = scmp.lt.s32.totalorder %s2334_s24, 3 }
   0xc   : > { %p216_p9 = pnand %p2101_p7, %p215_p8 }
   0xd   : > { %p245_p10 = scmp.lt.s32.totalorder (!%p216_p9), %s2403_s25, 1  ;;  %v2336_v0 = vmov (!%p216_p9), 0.0   ;;  %s2337_s14 = smov (!%p216_p9), 17   ;;  %v1182_v3 = vld [vmem:[%s2867_s2] sm:$0xf] (!%p216_p9)  ;;  %v2345_v4 = vmov (!%p216_p9), 0   ;;  %v258_v5 = vlaneseq (!%p216_p9) }
   0xe   : > { %219 = sbr.rel (%p216_p9) target bundleno = 853 (0x355), region = 44  ;;  %377 = vmatprep.mubr.f32.mxu0 (!%p216_p9), %v2336_v0  ;;  %1284 = vmatprep.mubr.f32.mxu1 (!%p216_p9), %v2336_v0  ;;  %s2338_s15 = smov (!%p216_p9), 16   ;;  %v263_v10 = vld [vmem:[%s2870_s5] sm:$0x3] (!%p216_p9)  ;;  %v2105_v11 = vld [vmem:[%s2870_s5 + $0x2] sm:$0x3] (!%p216_p9) }
   0xf   : > { %s2339_s16 = smov (!%p216_p9), 15   ;;  %s2340_s17 = smov (!%p216_p9), 1   ;;  %2270 = vset.pattern.permute.xlu0 (!%p216_p9), %v2345_v4  ;;  %v266_v6 = vshrl.u32 (!%p216_p9), %v258_v5, 7  ;;  %v2478_v7 = vand.u32 (!%p216_p9), 127, %v258_v5  ;;  %v2113_v18 = vld [vmem:[%s2870_s5 + $0x4] sm:$0x3] (!%p216_p9) }
  0x10   : > { %s2341_s18 = smov (!%p216_p9), 127   ;;  %s2342_s19 = smov (!%p216_p9), 113   ;;  %vm306_vm2 = vcmask (!%p216_p9), 1043456   ;;  %v2106_v30 = vld [vmem:[%s2866_s1 + $0x4] sm:$0xf] (!%p216_p9)  ;;  %vm302_vm4 = vcmask (!%p216_p9), 31744  }
  0x11   : > { %s2343_s20 = smov (!%p216_p9), 112   ;;  %s2344_s26 = smov (!%p216_p9), 111   ;;  %v2480_v8 = vsub.s32 (!%p216_p9), 0, %v266_v6  ;;  %v2482_v9 = vsub.s32 (!%p216_p9), 1, %v266_v6  ;;  %vm260_vm0 = vcmp.lt.s32.totalorder (!%p216_p9), %v2478_v7, 17  ;;  %vm282_vm1 = vcmp.lt.s32.totalorder (!%p216_p9), %v2478_v7, 16 }
  0x12   : > { %vm468_vm3 = vcmp.lt.s32.totalorder (!%p216_p9), %v2478_v7, 15  ;;  %v2118_v34 = vld [vmem:[%s2870_s5 + $0x6] sm:$0x3] (!%p216_p9)  ;;  %vm574_vm5 = vcmp.lt.s32.totalorder (!%p216_p9), %v2478_v7, 1  ;;  %v277_v43 = vld [vmem:[%s2866_s1] sm:$0xf] (!%p216_p9) }
  0x13   : > { %v2492_v14 = vrot.slane (!%p216_p9), %v263_v10, %v2482_v9  ;;  %v2496_v15 = vrot.slane (!%p216_p9), %v2105_v11, %v2480_v8  ;;  %v2499_v16 = vrot.slane (!%p216_p9), %v2105_v11, %v2482_v9  ;;  %v2502_v17 = vrot.slane (!%p216_p9), %v263_v10, %v2480_v8  ;;  %v2114_v48 = vld [vmem:[%s2866_s1 + $0x8] sm:$0xf] (!%p216_p9)  ;;  %v2119_v54 = vld [vmem:[%s2866_s1 + $0xc] sm:$0xf] (!%p216_p9) }
  0x14   : > { %v2520_v28 = vrot.slane (!%p216_p9), %v2113_v18, %v2482_v9  ;;  %v2539_v36 = vrot.slane (!%p216_p9), %v2113_v18, %v2480_v8  ;;  %v2546_v39 = vrot.slane (!%p216_p9), %v2118_v34, %v2482_v9  ;;  %v2558_v45 = vrot.slane (!%p216_p9), %v2118_v34, %v2480_v8  ;;  %v2127_v49 = vld [vmem:[%s2870_s5 + $0xa] sm:$0x3] (!%p216_p9)  ;;  %v2132_v56 = vld [vmem:[%s2870_s5 + $0xc] sm:$0x3] (!%p216_p9)  ;;  %v2137_v5 = vld [vmem:[%s2870_s5 + $0xe] sm:$0x3] (!%p216_p9) }
  0x15   : > { %s246_s9 = scalar_select %p245_p10, %s2403_s25, 1  ;;  %vm762_vm6 = vcmp.lt.s32.totalorder %v2478_v7, 127  ;;  %v2578_v52 = vrot.slane %v2127_v49, %v2482_v9  ;;  %vm868_vm7 = vcmp.lt.s32.totalorder %v2478_v7, 113  ;;  %v2594_v59 = vrot.slane %v2127_v49, %v2480_v8 }
  0x16   : > { %v2601_v61 = vrot.slane %v2132_v56, %v2482_v9  ;;  %vm974_vm8 = vcmp.lt.s32.totalorder %v2478_v7, 112  ;;  %v2617_v11 = vrot.slane %v2132_v56, %v2480_v8  ;;  %vm1080_vm9 = vcmp.lt.s32.totalorder %v2478_v7, 111 }
  0x17   : > { %s2187_s10 = sshll.u32 %s246_s9, 3 }
  0x18   : > { %s249_s13 = scalar_lea.vmem %s2865_s0, %s2187_s10 }
  0x19   : > { %v2437_v1 = vld [vmem:[%s249_s13] sm:$0xff] }
  0x1a   : > { %254 = vrot.lane.b32.xlu1 %v2437_v1, %s2337_s14  ;;  %278 = vrot.lane.b32.xlu0 %v2437_v1, %s2338_s15  ;;  %v2445_v2 = vcombine.high %v2437_v1, %v2437_v1 }
  0x1e   : > { %256 = vrot.lane.b32.xlu1 %v2445_v2, %s2337_s14  ;;  %280 = vrot.lane.b32.xlu0 %v2445_v2, %s2338_s15 }
  0x22   : > { %466 = vrot.lane.b32.xlu1 %v2445_v2, %s2339_s16  ;;  %464 = vrot.lane.b32.xlu0 %v2437_v1, %s2339_s16 }
  0x26   : > { %572 = vrot.lane.b32.xlu1 %v2445_v2, %s2340_s17  ;;  %570 = vrot.lane.b32.xlu0 %v2437_v1, %s2340_s17 }
  0x2a   : > { %760 = vrot.lane.b32.xlu1 %v2445_v2, %s2341_s18  ;;  %758 = vrot.lane.b32.xlu0 %v2437_v1, %s2341_s18 }
  0x2e   : > { %866 = vrot.lane.b32.xlu1 %v2445_v2, %s2342_s19  ;;  %864 = vrot.lane.b32.xlu0 %v2437_v1, %s2342_s19 }
  0x32   : > { %972 = vrot.lane.b32.xlu1 %v2445_v2, %s2343_s20  ;;  %970 = vrot.lane.b32.xlu0 %v2437_v1, %s2343_s20 }
  0x36   : > { %1078 = vrot.lane.b32.xlu1 %v2445_v2, %s2344_s26  ;;  %1076 = vrot.lane.b32.xlu0 %v2437_v1, %s2344_s26 }
  0x3a   : > { %1185 = vperm.xlu0 %2270, %v1182_v3   ;;  %v2123_v3 = vld [vmem:[%s2866_s1 + $0x10] sm:$0xf] }
  0x8c   : > { %v255_v12 = vpop.permute.xlu1 %254  ;;  %v279_v13 = vpop.permute.xlu0 %278 }
  0x90   : > { %v257_v19 = vpop.permute.xlu1 %256  ;;  %v281_v20 = vpop.permute.xlu0 %280 }
  0x91   : > { %v261_v21 = vsel %vm260_vm0, %v255_v12, %v257_v19  ;;  %v262_v22 = vsel %vm260_vm0, %v257_v19, %v255_v12  ;;  %v283_v23 = vsel %vm282_vm1, %v279_v13, %v281_v20  ;;  %v284_v24 = vsel %vm282_vm1, %v281_v20, %v279_v13  ;;  %v2128_v20 = vld [vmem:[%s2866_s1 + $0x14] sm:$0xf] }
  0x92   : > { %v276_v25 = vmul.f32 %v2492_v14, %v261_v21  ;;  %v298_v26 = vmul.f32 %v2496_v15, %v284_v24  ;;  %v299_v27 = vmul.f32 %v2499_v16, %v283_v23  ;;  %v275_v29 = vmul.f32 %v2502_v17, %v262_v22  ;;  %v2142_v22 = vld [vmem:[%s2870_s5 + $0x10] sm:$0x3] }
  0x93   : > { %v2624_v13 = vrot.slane %v2137_v5, %v2482_v9 }
  0x94   : > { %2107 = vmatprep.subr.msk.mxu0 %vm306_vm2, %v299_v27  ;;  %v467_v31 = vpop.permute.xlu1 %466  ;;  %v465_v32 = vpop.permute.xlu0 %464  ;;  %v2647_v27 = vrot.slane %v2142_v22, %v2482_v9 }
  0x95   : > { %2108 = vmatpush1.msk.msra.mxu0 %vm306_vm2, %v298_v26  ;;  %v469_v33 = vsel %vm468_vm3, %v465_v32, %v467_v31  ;;  %v470_v37 = vsel %vm468_vm3, %v467_v31, %v465_v32  ;;  %v2133_v31 = vld [vmem:[%s2866_s1 + $0x18] sm:$0xf] }
  0x96   : > { %2109 = vmatmul.mubr.msk.f32.vlgmr.msra.gmra.mrb[0].mxu0 %vm302_vm4, %v2106_v30  ;;  %2110 = vmatprep.subr.msk.mxu0 %vm306_vm2, %v276_v25  ;;  %v485_v35 = vmul.f32 %v2520_v28, %v469_v33  ;;  %v484_v42 = vmul.f32 %v2539_v36, %v470_v37  ;;  %v2640_v25 = vrot.slane %v2137_v5, %v2480_v8 }
  0x97   : > { %2111 = vmatpush1.msk.msra.mxu0 %vm306_vm2, %v275_v29  ;;  %457 = vmatprep.mubr.f32.mxu0 %v2336_v0  ;;  %v2659_v33 = vrot.slane %v2142_v22, %v2480_v8  ;;  %v2143_v8 = vld [vmem:[%s2866_s1 + $0x20] sm:$0xf] }
  0x98   : > { %2115 = vmatprep.subr.msk.mxu0 %vm306_vm2, %v485_v35  ;;  %v573_v38 = vpop.permute.xlu1 %572  ;;  %v571_v40 = vpop.permute.xlu0 %570  ;;  %v2138_v35 = vld [vmem:[%s2866_s1 + $0x1c] sm:$0xf] }
  0x99   : > { %v575_v41 = vsel %vm574_vm5, %v571_v40, %v573_v38  ;;  %v576_v46 = vsel %vm574_vm5, %v573_v38, %v571_v40 }
  0x9a   : > { %v591_v44 = vmul.f32 %v2546_v39, %v575_v41  ;;  %v590_v47 = vmul.f32 %v2558_v45, %v576_v46  ;;  %v2007_v46 = vld [vmem:[%s2869_s4] sm:$0xf] }
  0x9c   : > { %v761_v50 = vpop.permute.xlu1 %760  ;;  %v759_v51 = vpop.permute.xlu0 %758 }
  0x9d   : > { %v764_v53 = vsel %vm762_vm6, %v761_v50, %v759_v51  ;;  %v763_v60 = vsel %vm762_vm6, %v759_v51, %v761_v50 }
  0x9e   : > { %2112 = vmatmul.mubr.msk.f32.vlgmr.msra.gmra.mrb[0].mxu0 %vm302_vm4, %v277_v43  ;;  %v779_v55 = vmul.f32 %v2578_v52, %v764_v53  ;;  %v778_v63 = vmul.f32 %v2594_v59, %v763_v60 }
  0x9f   : > { %2116 = vmatpush1.msk.msra.mxu0 %vm306_vm2, %v484_v42  ;;  %561 = vmatprep.mubr.f32.mxu0 %v2336_v0 }
  0xa0   : > { %2120 = vmatprep.subr.msk.mxu0 %vm306_vm2, %v591_v44  ;;  %v867_v57 = vpop.permute.xlu1 %866  ;;  %v865_v58 = vpop.permute.xlu0 %864 }
  0xa1   : > { %v870_v62 = vsel %vm868_vm7, %v867_v57, %v865_v58  ;;  %v869_v12 = vsel %vm868_vm7, %v865_v58, %v867_v57 }
  0xa2   : > { %v885_v4 = vmul.f32 %v2601_v61, %v870_v62  ;;  %v884_v19 = vmul.f32 %v2617_v11, %v869_v12 }
  0xa4   : > { %v973_v6 = vpop.permute.xlu1 %972  ;;  %v971_v10 = vpop.permute.xlu0 %970 }
  0xa5   : > { %v976_v18 = vsel %vm974_vm8, %v973_v6, %v971_v10  ;;  %v975_v26 = vsel %vm974_vm8, %v971_v10, %v973_v6 }
  0xa6   : > { %2117 = vmatmul.mubr.msk.f32.vlgmr.msra.gmra.mrb[0].mxu0 %vm302_vm4, %v2114_v48  ;;  %v991_v21 = vmul.f32 %v2624_v13, %v976_v18  ;;  %v990_v30 = vmul.f32 %v2640_v25, %v975_v26 }
  0xa7   : > { %2121 = vmatpush1.msk.msra.mxu0 %vm306_vm2, %v590_v47  ;;  %667 = vmatprep.mubr.f32.mxu0 %v2336_v0 }
  0xa8   : > { %2124 = vmatprep.subr.msk.mxu0 %vm306_vm2, %v2445_v2  ;;  %v1079_v23 = vpop.permute.xlu1 %1078  ;;  %v1077_v24 = vpop.permute.xlu0 %1076 }
  0xa9   : > { %v1082_v29 = vsel %vm1080_vm9, %v1079_v23, %v1077_v24  ;;  %v1081_v9 = vsel %vm1080_vm9, %v1077_v24, %v1079_v23 }
  0xaa   : > { %v1097_v32 = vmul.f32 %v2647_v27, %v1082_v29  ;;  %v1096_v34 = vmul.f32 %v2659_v33, %v1081_v9 }
  0xae   : > { %2122 = vmatmul.mubr.msk.f32.vlgmr.msra.gmra.mrb[0].mxu0 %vm302_vm4, %v2119_v54 }
  0xaf   : > { %2125 = vmatpush1.msk.msra.mxu0 %vm306_vm2, %v2437_v1  ;;  %749 = vmatprep.mubr.f32.mxu0 %v2336_v0 }
  0xb0   : > { %2129 = vmatprep.subr.msk.mxu0 %vm306_vm2, %v779_v55  ;;  %v2147_v55 = vld [vmem:[%s2868_s3 + $0x4] sm:$0xf] }
  0xb6   : > { %2126 = vmatmul.mubr.msk.f32.vlgmr.msra.gmra.mrb[0].mxu0 %vm302_vm4, %v2123_v3 }
  0xb7   : > { %2130 = vmatpush1.msk.msra.mxu0 %vm306_vm2, %v778_v63  ;;  %855 = vmatprep.mubr.f32.mxu0 %v2336_v0 }
  0xb8   : > { %2134 = vmatprep.subr.msk.mxu0 %vm306_vm2, %v885_v4 }
  0xb9   : > { %v1186_v37 = vpop.permute.xlu0 %1185 }
  0xbe   : > { %2131 = vmatmul.mubr.msk.f32.vlgmr.msra.gmra.mrb[0].mxu0 %vm302_vm4, %v2128_v20 }
  0xbf   : > { %2135 = vmatpush1.msk.msra.mxu0 %vm306_vm2, %v884_v19  ;;  %961 = vmatprep.mubr.f32.mxu0 %v2336_v0 }
  0xc0   : > { %2139 = vmatprep.subr.msk.mxu0 %vm306_vm2, %v991_v21  ;;  %v2158_v21 = vld [vmem:[%s2868_s3 + $0xc] sm:$0xf] }
  0xc6   : > { %2136 = vmatmul.mubr.msk.f32.vlgmr.msra.gmra.mrb[0].mxu0 %vm302_vm4, %v2133_v31 }
  0xc7   : > { %2140 = vmatpush1.msk.msra.mxu0 %vm306_vm2, %v990_v30  ;;  %1067 = vmatprep.mubr.f32.mxu0 %v2336_v0 }
  0xc8   : > { %2144 = vmatprep.subr.msk.mxu0 %vm306_vm2, %v1097_v32 }
  0xce   : > { %2141 = vmatmul.mubr.msk.f32.vlgmr.msra.gmra.mrb[0].mxu0 %vm302_vm4, %v2138_v35 }
  0xcf   : > { %2145 = vmatpush1.msk.msra.mxu0 %vm306_vm2, %v1096_v34  ;;  %1173 = vmatprep.mubr.f32.mxu0 %v2336_v0 }
  0xd6   : > { %2146 = vmatmul.mubr.msk.f32.vlgmr.msra.gmra.mrb[0].mxu0 %vm302_vm4, %v2143_v8 }
 0x1a9   : > { %v1175_v38 = vpop.f32.mrb[0].mxu0 }
 0x1aa   : > { %v1188_v40 = vadd.f32 %v1186_v37, %v1175_v38  ;;  %v1177_v41 = vpop.f32.mrb[1].mxu0 }
 0x1ab   : > { %v1189_v43 = vadd.f32 %v1186_v37, %v1177_v41 }
 0x1ac   : > { %v2676_v42 = vmax.f32 %v1188_v40, 0.0 }
 0x1ad   : > { %v1191_v44 = vmax.f32 %v1189_v43, 0.0  ;;  %v2174_v43 = vld [vmem:[%s2868_s3 + $0x1c] sm:$0xf] }
 0x1ae   : > { %1192 = vrot.lane.b32.xlu0 %v2676_v42, %s2337_s14  ;;  %1201 = vrot.lane.b32.xlu1 %v2676_v42, %s2338_s15 }
 0x1b2   : > { %1371 = vrot.lane.b32.xlu0 %v2676_v42, %s2339_s16  ;;  %1203 = vrot.lane.b32.xlu1 %v1191_v44, %s2338_s15 }
 0x1b6   : > { %1463 = vrot.lane.b32.xlu0 %v2676_v42, %s2340_s17  ;;  %1194 = vrot.lane.b32.xlu1 %v1191_v44, %s2337_s14 }
 0x1ba   : > { %1639 = vrot.lane.b32.xlu0 %v2676_v42, %s2341_s18  ;;  %1373 = vrot.lane.b32.xlu1 %v1191_v44, %s2339_s16 }
 0x1be   : > { %1731 = vrot.lane.b32.xlu0 %v2676_v42, %s2342_s19  ;;  %1465 = vrot.lane.b32.xlu1 %v1191_v44, %s2340_s17 }
 0x1c2   : > { %1823 = vrot.lane.b32.xlu0 %v2676_v42, %s2343_s20  ;;  %1641 = vrot.lane.b32.xlu1 %v1191_v44, %s2341_s18 }
 0x1c6   : > { %1915 = vrot.lane.b32.xlu0 %v2676_v42, %s2344_s26  ;;  %1733 = vrot.lane.b32.xlu1 %v1191_v44, %s2342_s19  ;;  %s242_s19 = sand.u32 1, %s2326_s22  }
 0x1c7   : > { %s2025_s13 = scalar_lea.sflag [#allocation3], %s242_s19 }
 0x1ca   : > { %2010 = vperm.xlu0 %2270, %v2007_v46   ;;  %1825 = vrot.lane.b32.xlu1 %v1191_v44, %s2343_s20  ;;  %s2102_s20 = sshll.u32 %s242_s19, 3 }
 0x1cb   : > { %s244_s29 = scalar_lea.vmem [#allocation2], %s2102_s20 }
 0x1cc   : > { %s2039_s9 = sshll.u32 %s244_s29, 4  ;;  %s2825_s9 = int_to_ptr.vmem [resolvable:$true] %s2039_s9 }
 0x1cd   : > { %s2272_s28 = scalar_lea.vmem %s2825_s9, 128 }
 0x1ce   : > { %1917 = vrot.lane.b32.xlu1 %v1191_v44, %s2344_s26  ;;  %s2188_s26 = sshll.u32 %s2403_s25, 7  ;;  %p2273_p11 = scmp.ne.s32.totalorder %s2825_s9, %s2272_s28 }
 0x1cf   : > { %s2823_s12 = scalar_lea.hbm %s2871_s6, %s2188_s26  ;;  %s2346_s25 = smov [#allocation2]  }
 0x1d0   : > { %p2274_p12 = pnand %p2273_p11, %p2420_p5  ;;  %s2276_s14 = sshll.u32 %s2346_s25, 4  ;;  %s2277_s14 = int_to_ptr.vmem [resolvable:$false] %s2276_s14 }
 0x1d1   : > { %s2278_s15 = scalar_lea.vmem %s2277_s14, 256  ;;  %p2279_p0 = scmp.lt.s32.totalorder %s2825_s9, %s2277_s14 }
 0x1d2   : > { %p2275_p13 = pneg %p2274_p12  ;;  %p2280_p1 = scmp.lt.s32.totalorder %s2278_s15, %s2272_s28 }
 0x1d4   : > { %p2281_p2 = por %p2280_p1, %p2279_p0 }
 0x1d6   : > { %p2282_p3 = pnand %p2281_p2, %p2275_p13 }
 0x220   : > { %v1202_v47 = vpop.permute.xlu1 %1201  ;;  %v1193_v48 = vpop.permute.xlu0 %1192 }
 0x224   : > { %v1204_v49 = vpop.permute.xlu1 %1203  ;;  %v1372_v60 = vpop.permute.xlu0 %1371 }
 0x225   : > { %v1205_v50 = vsel %vm282_vm1, %v1202_v47, %v1204_v49  ;;  %v1206_v51 = vsel %vm282_vm1, %v1204_v49, %v1202_v47 }
 0x226   : > { %v1207_v53 = vmul.f32 %v1206_v51, %v2496_v15  ;;  %v1208_v54 = vmul.f32 %v1205_v50, %v2499_v16 }
 0x228   : > { %2148 = vmatprep.subr.msk.mxu1 %vm306_vm2, %v1208_v54  ;;  %v1195_v56 = vpop.permute.xlu1 %1194 }
 0x229   : > { %v1196_v57 = vsel %vm260_vm0, %v1193_v48, %v1195_v56  ;;  %v1197_v58 = vsel %vm260_vm0, %v1195_v56, %v1193_v48  ;;  %2149 = vmatpush1.msk.msra.mxu1 %vm306_vm2, %v1207_v53 }
 0x22a   : > { %v1198_v15 = vmul.f32 %v1197_v58, %v2502_v17  ;;  %v1199_v16 = vmul.f32 %v1196_v57, %v2492_v14  ;;  %2150 = vmatmul.mubr.msk.f32.vlgmr.msra.gmra.mrb[0].mxu1 %vm302_vm4, %v2147_v55  ;;  %v1200_v14 = vld [vmem:[%s2868_s3] sm:$0xf]  ;;  %v1464_v17 = vpop.permute.xlu0 %1463 }
 0x22b   : > { %1364 = vmatprep.mubr.f32.mxu1 %v2336_v0 }
 0x22c   : > { %2151 = vmatprep.subr.msk.mxu1 %vm306_vm2, %v1199_v16  ;;  %v1374_v62 = vpop.permute.xlu1 %1373 }
 0x22d   : > { %v1375_v63 = vsel %vm468_vm3, %v1372_v60, %v1374_v62  ;;  %2152 = vmatpush1.msk.msra.mxu1 %vm306_vm2, %v1198_v15  ;;  %v1376_v3 = vsel %vm468_vm3, %v1374_v62, %v1372_v60 }
 0x22e   : > { %v1378_v4 = vmul.f32 %v1375_v63, %v2520_v28  ;;  %v1377_v6 = vmul.f32 %v1376_v3, %v2539_v36  ;;  %v2154_v36 = vld [vmem:[%s2868_s3 + $0x8] sm:$0xf]  ;;  %v1640_v19 = vpop.permute.xlu0 %1639 }
 0x230   : > { %2155 = vmatprep.subr.msk.mxu1 %vm306_vm2, %v1378_v4  ;;  %v1466_v5 = vpop.permute.xlu1 %1465 }
 0x231   : > { %v1467_v10 = vsel %vm574_vm5, %v1464_v17, %v1466_v5  ;;  %v1468_v28 = vsel %vm574_vm5, %v1466_v5, %v1464_v17 }
 0x232   : > { %v1470_v12 = vmul.f32 %v1467_v10, %v2546_v39  ;;  %2153 = vmatmul.mubr.msk.f32.vlgmr.msra.gmra.mrb[0].mxu1 %vm302_vm4, %v1200_v14  ;;  %v1469_v18 = vmul.f32 %v1468_v28, %v2558_v45  ;;  %v1732_v23 = vpop.permute.xlu0 %1731 }
 0x233   : > { %2156 = vmatpush1.msk.msra.mxu1 %vm306_vm2, %v1377_v6  ;;  %1454 = vmatprep.mubr.f32.mxu1 %v2336_v0 }
 0x234   : > { %2159 = vmatprep.subr.msk.mxu1 %vm306_vm2, %v1470_v12  ;;  %v1642_v39 = vpop.permute.xlu1 %1641 }
 0x235   : > { %v1644_v20 = vsel %vm762_vm6, %v1642_v39, %v1640_v19  ;;  %v1643_v24 = vsel %vm762_vm6, %v1640_v19, %v1642_v39 }
 0x236   : > { %v1646_v22 = vmul.f32 %v1644_v20, %v2578_v52  ;;  %v2162_v52 = vld [vmem:[%s2868_s3 + $0x10] sm:$0xf]  ;;  %v1645_v29 = vmul.f32 %v1643_v24, %v2594_v59  ;;  %v1824_v32 = vpop.permute.xlu0 %1823  ;;  %v2166_v59 = vld [vmem:[%s2868_s3 + $0x14] sm:$0xf] }
 0x238   : > { %v1734_v45 = vpop.permute.xlu1 %1733 }
 0x239   : > { %v1736_v26 = vsel %vm868_vm7, %v1734_v45, %v1732_v23  ;;  %v1735_v9 = vsel %vm868_vm7, %v1732_v23, %v1734_v45 }
 0x23a   : > { %2157 = vmatmul.mubr.msk.f32.vlgmr.msra.gmra.mrb[0].mxu1 %vm302_vm4, %v2154_v36  ;;  %v1738_v30 = vmul.f32 %v1736_v26, %v2601_v61  ;;  %v1737_v61 = vmul.f32 %v1735_v9, %v2617_v11  ;;  %v1916_v37 = vpop.permute.xlu0 %1915  ;;  %v2170_v11 = vld [vmem:[%s2868_s3 + $0x18] sm:$0xf] }
 0x23b   : > { %2160 = vmatpush1.msk.msra.mxu1 %vm306_vm2, %v1469_v18  ;;  %1546 = vmatprep.mubr.f32.mxu1 %v2336_v0 }
 0x23c   : > { %2163 = vmatprep.subr.msk.mxu1 %vm306_vm2, %v1191_v44  ;;  %v1826_v31 = vpop.permute.xlu1 %1825 }
 0x23d   : > { %v1828_v34 = vsel %vm974_vm8, %v1826_v31, %v1824_v32  ;;  %v1827_v38 = vsel %vm974_vm8, %v1824_v32, %v1826_v31 }
 0x23e   : > { %v1830_v35 = vmul.f32 %v1828_v34, %v2624_v13  ;;  %v1829_v13 = vmul.f32 %v1827_v38, %v2640_v25  ;;  %v2178_v25 = vld [vmem:[%s2868_s3 + $0x20] sm:$0xf] }
 0x240   : > { %v1918_v8 = vpop.permute.xlu1 %1917 }
 0x241   : > { %v1920_v40 = vsel %vm1080_vm9, %v1918_v8, %v1916_v37 }
 0x242   : > { %2161 = vmatmul.mubr.msk.f32.vlgmr.msra.gmra.mrb[0].mxu1 %vm302_vm4, %v2158_v21  ;;  %v1922_v41 = vmul.f32 %v1920_v40, %v2647_v27 }
 0x243   : > { %2164 = vmatpush1.msk.msra.mxu1 %vm306_vm2, %v2676_v42  ;;  %1630 = vmatprep.mubr.f32.mxu1 %v2336_v0  ;;  %v1919_v42 = vsel %vm1080_vm9, %v1916_v37, %v1918_v8 }
 0x244   : > { %2167 = vmatprep.subr.msk.mxu1 %vm306_vm2, %v1646_v22  ;;  %v1921_v44 = vmul.f32 %v1919_v42, %v2659_v33 }
 0x249   : > { %v2011_v7 = vpop.permute.xlu0 %2010 }
 0x24a   : > { %2165 = vmatmul.mubr.msk.f32.vlgmr.msra.gmra.mrb[0].mxu1 %vm302_vm4, %v2162_v52 }
 0x24b   : > { %2168 = vmatpush1.msk.msra.mxu1 %vm306_vm2, %v1645_v29  ;;  %1722 = vmatprep.mubr.f32.mxu1 %v2336_v0 }
 0x24c   : > { %2171 = vmatprep.subr.msk.mxu1 %vm306_vm2, %v1738_v30 }
 0x252   : > { %2169 = vmatmul.mubr.msk.f32.vlgmr.msra.gmra.mrb[0].mxu1 %vm302_vm4, %v2166_v59 }
 0x253   : > { %2172 = vmatpush1.msk.msra.mxu1 %vm306_vm2, %v1737_v61  ;;  %1814 = vmatprep.mubr.f32.mxu1 %v2336_v0 }
 0x254   : > { %2175 = vmatprep.subr.msk.mxu1 %vm306_vm2, %v1830_v35 }
 0x25a   : > { %2173 = vmatmul.mubr.msk.f32.vlgmr.msra.gmra.mrb[0].mxu1 %vm302_vm4, %v2170_v11 }
 0x25b   : > { %2176 = vmatpush1.msk.msra.mxu1 %vm306_vm2, %v1829_v13  ;;  %1906 = vmatprep.mubr.f32.mxu1 %v2336_v0 }
 0x25c   : > { %2179 = vmatprep.subr.msk.mxu1 %vm306_vm2, %v1922_v41 }
 0x262   : > { %2177 = vmatmul.mubr.msk.f32.vlgmr.msra.gmra.mrb[0].mxu1 %vm302_vm4, %v2174_v43 }
 0x263   : > { %2180 = vmatpush1.msk.msra.mxu1 %vm306_vm2, %v1921_v44  ;;  %1998 = vmatprep.mubr.f32.mxu1 %v2336_v0 }
 0x26a   : > { %2181 = vmatmul.mubr.msk.f32.vlgmr.msra.gmra.mrb[0].mxu1 %vm302_vm4, %v2178_v25 }
 0x33d   : > { %v2000_v27 = vpop.f32.mrb[0].mxu1 }
 0x33e   : > { %v2013_v46 = vadd.f32 %v2011_v7, %v2000_v27  ;;  %v2002_v47 = vpop.f32.mrb[1].mxu1 }
 0x33f   : > { %v2014_v33 = vadd.f32 %v2011_v7, %v2002_v47 }
 0x340   : > { %v2015_v48 = vadd.f32 %v2013_v46, %v2437_v1 }
 0x341   : > { %v2016_v49 = vadd.f32 %v2014_v33, %v2445_v2 }
 0x342   : > { %v2017_v50 = vmax.f32 %v2015_v48, 0.0 }
 0x343   : > { %v2018_v0 = vmax.f32 %v2016_v49, 0.0 }
 0x345   : > { %v2021_v51 = vcombine.low %v2017_v50, %v2018_v0 }
 0x347   : > { %2023 = vst [vmem:[%s244_s29] sm:$0xff] %v2021_v51 }
 0x348   : > { %2285 = shalt.err (!%p2282_p3)
}
 0x349   : > { %s2286_s16 = scalar_lea.hbm %s2823_s12, 128  ;;  %s2290_s19 = scalar_lea.hbm %s2871_s6, 256 }
 0x34a   : > { %p2287_p4 = scmp.ne.s32.totalorder %s2823_s12, %s2286_s16  ;;  %p2291_p9 = scmp.lt.u32.totalorder %s2823_s12, %s2871_s6 }
 0x34b   : > { %p2292_p10 = scmp.lt.u32.totalorder %s2290_s19, %s2286_s16  ;;  %p2294_p12 = scmp.lt.u32.totalorder %s2286_s16, %s2823_s12 }
 0x34c   : > { %p2288_p7 = pnand %p2287_p4, %p2420_p5 }
 0x34d   : > { %p2293_p11 = por %p2292_p10, %p2291_p9 }
 0x34e   : > { %p2289_p8 = pneg %p2288_p7 }
 0x34f   : > { %p2295_p13 = por %p2294_p12, %p2293_p11 }
 0x351   : > { %p2296_p0 = pnand %p2295_p13, %p2289_p8 }
 0x353   : > { %2299 = shalt.err (!%p2296_p0)
}
 0x354   : > { %2221 = dma.vmem_to_hbm [thread:$0]  (%p2420_p5), %s2825_s9, 128, %s2823_s12, %s2025_s13  }
 0x355 PF: > { %p2227_p1 = scmp.ge.s32.totalorder %s2334_s24, 2  ;;  %s2051_s29 = sand.u32 1, %s2322_s21  }
 0x356   : > { %s2052_s10 = scalar_lea.sflag [#allocation3], %s2051_s29 }
 0x357   : > { %p2224_p2 = pnand %p2227_p1, %p2424_p6 }
 0x359   : > { %2317 = dma.done.wait (!%p2224_p2), %s2052_s10, 128  }
 0x35a   : > { %2319 = vsyncadd (!%p2224_p2), %s2052_s10, 4294967168  ;;  %p16_p3 = scmp.ge.s32.totalorder %s2407_s27, 4   ;;  %s2874_s21 = smov %s2326_s22 }
 0x35b   : > { %s2875_s22 = smov %s2330_s23  ;;  %s2876_s23 = smov %s2418_s30 }
 0x35c   : > { %s2877_s24 = smov %s2407_s27  ;;  %18 = sbr.rel (!%p16_p3) target bundleno = 3 (0x3), region = 102 }
 0x363   :  { %2057 = vsyncpa [#allocation3], 1 }
 0x364   :  { %2059 = vsyncpa [#allocation3 + $0x1], 1 }

</bundles_post_ra>
